<compile_context>
chip_gen: v7x
topology: tpu7x:2x2x1
jax: 0.10.0
libtpu: 0.0.40
codegen_flags: <defaults>
</compile_context>

<pallas_src>
import functools

import jax
import jax.numpy as jnp
from jax.experimental import pallas as pl
from jax.experimental.pallas import tpu as pltpu


def _mha_kernel(x_ref, wqkv_ref, wp_ref, bp_ref, o_ref, *, B, T, H, Hs):
    """Single invocation: whole batch + all heads.

    x_ref    : (B*T, E)     tokens, bf16
    wqkv_ref : (E, 3*E)     fused [Wq_all | Wk_all | Wv_all], bf16
    wp_ref   : (H, Hs, E)   output-projection rows split per head, bf16
    bp_ref   : (1, E)       output-projection bias, f32
    o_ref    : (B*T, E)     output, f32
    """
    E = H * Hs
    BT = B * T

    x = x_ref[...]                                    # (B*T, E)   bf16
    wqkv = wqkv_ref[...]                              # (E, 3E)    bf16

    # --- fused QKV projection: one MXU matmul instead of 3*H tiny dots ---
    qkv = jnp.dot(x, wqkv, preferred_element_type=jnp.float32)   # (B*T, 3E) f32
    qkv = qkv.reshape(B, T, 3 * E)                    # sublane-aligned split

    # Additive causal-mask bias, built once and shared by all heads
    # (0 where allowed, -1e9 where masked — matches PyTorch masked_fill value).
    row = jax.lax.broadcasted_iota(jnp.int32, (T, T), 0)
    col = jax.lax.broadcasted_iota(jnp.int32, (T, T), 1)
    mask_bias = jnp.where(row >= col, jnp.float32(0.0),
                          jnp.float32(-1e9))[None, :, :]          # (1, T, T)

    scale = jnp.float32(E ** (-0.5))   # PyTorch module scales by embed_dim, not head_size

    proj_acc = None
    for h in range(H):                                # H small & static -> unrolled
        q = qkv[:, :, h * Hs:(h + 1) * Hs].astype(jnp.bfloat16)              # (B,T,Hs)
        k = qkv[:, :, E + h * Hs:E + (h + 1) * Hs].astype(jnp.bfloat16)      # (B,T,Hs)
        v = qkv[:, :, 2 * E + h * Hs:2 * E + (h + 1) * Hs].astype(jnp.bfloat16)

        # batched attention scores over the batch dim (single batch axis: safe lowering)
        s = jnp.einsum('bqd,bkd->bqk', q, k,
                       preferred_element_type=jnp.float32) * scale + mask_bias  # (B,T,T)

        # explicit softmax: exp on the EUP, approx reciprocal on the EUP slot
        m = jnp.max(s, axis=-1, keepdims=True)
        p = jnp.exp(s - m)
        denom = jnp.sum(p, axis=-1, keepdims=True)
        wei = p * pl.reciprocal(denom, approx=True)
        # dropout(p=0.3) on attention weights -> identity in eval mode

        ctx = jnp.einsum('bqk,bkd->bqd', wei.astype(jnp.bfloat16), v,
                         preferred_element_type=jnp.float32)                 # (B,T,Hs) f32
        ctx = ctx.reshape(BT, Hs).astype(jnp.bfloat16)

        # Fold head h straight into the output projection (register-resident,
        # no VMEM scratch / lane concat needed):
        contrib = jnp.dot(ctx, wp_ref[h], preferred_element_type=jnp.float32)  # (BT, E)
        proj_acc = contrib if proj_acc is None else proj_acc + contrib

    out = proj_acc + bp_ref[...]                      # (BT, E) + (1, E), f32
    # dropout(p=0.3) on the projection output -> identity in eval mode
    o_ref[...] = out.astype(o_ref.dtype)


def multi_attention(x, wq, wk, wv, wp, bp):
    """x: (B, T, E); wq/wk/wv: (H, E, Hs) in (in, out) orientation;
    wp: (E, E) in (in, out) orientation; bp: (E,)."""
    B, T, E = x.shape
    H, _, Hs = wq.shape
    orig_dtype = x.dtype

    # --- wrapper-side weight prep (one-time cost, outside the kernel) ---
    def flatten_heads(w):                             # (H, E, Hs) -> (E, H*Hs)
        return jnp.transpose(w, (1, 0, 2)).reshape(E, H * Hs)

    w_qkv = jnp.concatenate(
        [flatten_heads(wq), flatten_heads(wk), flatten_heads(wv)],
        axis=-1).astype(jnp.bfloat16)                 # (E, 3E) bf16
    wp3 = wp.reshape(H, Hs, E).astype(jnp.bfloat16)   # per-head projection rows
    bp2 = bp.reshape(1, E).astype(jnp.float32)
    x2 = x.reshape(B * T, E).astype(jnp.bfloat16)     # bf16 halves input DMA bytes

    kernel = functools.partial(_mha_kernel, B=B, T=T, H=H, Hs=Hs)
    out = pl.pallas_call(
        kernel,
        out_shape=jax.ShapeDtypeStruct((B * T, E), orig_dtype),
        in_specs=[
            pl.BlockSpec(memory_space=pltpu.MemorySpace.VMEM),   # x
            pl.BlockSpec(memory_space=pltpu.MemorySpace.VMEM),   # fused W_qkv
            pl.BlockSpec(memory_space=pltpu.MemorySpace.VMEM),   # Wp (per head)
            pl.BlockSpec(memory_space=pltpu.MemorySpace.VMEM),   # bias
        ],
        out_specs=pl.BlockSpec(memory_space=pltpu.MemorySpace.VMEM),
    )(x2, w_qkv, wp3, bp2)
    return out.reshape(B, T, E)


def _reference(x, wq, wk, wv, wp, bp):
    """Pure-JAX f32 reference matching the PyTorch forward (eval mode)."""
    B, T, E = x.shape
    H, _, Hs = wq.shape
    scale = E ** (-0.5)
    mask = jnp.tril(jnp.ones((T, T), dtype=bool))
    heads = []
    for h in range(H):
        q = x @ wq[h]
        k = x @ wk[h]
        v = x @ wv[h]
        wei = (q @ jnp.swapaxes(k, -2, -1)) * scale
        wei = jnp.where(mask, wei, -1e9)
        wei = jax.nn.softmax(wei, axis=-1)
        heads.append(wei @ v)
    cat = jnp.concatenate(heads, axis=-1)
    return cat @ wp + bp


if __name__ == "__main__":
    # small shapes consistent with the module
    num_heads = 4
    block_size = 8      # T (sequence length == block)
    embed_dim = 32      # E
    head_size = embed_dim // num_heads
    batch = 2

    key = jax.random.PRNGKey(0)
    kx, kq, kk, kv, kp, kb = jax.random.split(key, 6)

    x = jax.random.normal(kx, (batch, block_size, embed_dim), dtype=jnp.float32)
    wq = 0.1 * jax.random.normal(kq, (num_heads, embed_dim, head_size), jnp.float32)
    wk = 0.1 * jax.random.normal(kk, (num_heads, embed_dim, head_size), jnp.float32)
    wv = 0.1 * jax.random.normal(kv, (num_heads, embed_dim, head_size), jnp.float32)
    wp = 0.1 * jax.random.normal(kp, (embed_dim, embed_dim), jnp.float32)
    bp = 0.1 * jax.random.normal(kb, (embed_dim,), jnp.float32)

    out = multi_attention(x, wq, wk, wv, wp, bp)
    out = jax.block_until_ready(out)

    ref = _reference(x, wq, wk, wv, wp, bp)
    assert out.shape == (batch, block_size, embed_dim)
    # bf16 MXU inputs + approx reciprocal -> slightly looser tolerance than pure f32
    assert jnp.allclose(out, ref, atol=2e-2, rtol=2e-2), "mismatch vs reference"

    print("KERNEL_OK")
</pallas_src>

<mosaic_0001>
module attributes {stable_mosaic.version = 11 : i64} {
  func.func @_mha_kernel(%arg0: memref<16x32xbf16, #tpu.memory_space<vmem>>, %arg1: memref<32x96xbf16, #tpu.memory_space<vmem>>, %arg2: memref<4x8x32xbf16, #tpu.memory_space<vmem>>, %arg3: memref<1x32xf32, #tpu.memory_space<vmem>>, %arg4: memref<16x32xf32, #tpu.memory_space<vmem>>) attributes {dimension_semantics = [], scalar_prefetch = 0 : i64, scratch_operands = 0 : i64, tpu.core_type = #tpu.core_type<tc>} {
    %c0 = arith.constant 0 : index
    %c0_0 = arith.constant 0 : index
    %0 = vector.load %arg0[%c0, %c0_0] : memref<16x32xbf16, #tpu.memory_space<vmem>>, vector<16x32xbf16>
    %c0_1 = arith.constant 0 : index
    %c0_2 = arith.constant 0 : index
    %1 = vector.load %arg1[%c0_1, %c0_2] : memref<32x96xbf16, #tpu.memory_space<vmem>>, vector<32x96xbf16>
    %cst = arith.constant dense<0.000000e+00> : vector<16x96xf32>
    %2 = tpu.matmul %0, %1, %cst {dimension_numbers = #tpu.dot_dimension_numbers<[1], [0], [0], [1], [0, 0, 1, 1], [], []>} : vector<16x32xbf16>, vector<32x96xbf16>, vector<16x96xf32> -> vector<16x96xf32>
    %3 = vector.shape_cast %2 : vector<16x96xf32> to vector<2x8x96xf32>
    %4 = tpu.iota {dimensions = array<i32: 0>} : vector<8x8xi32>
    %5 = tpu.iota {dimensions = array<i32: 1>} : vector<8x8xi32>
    %6 = arith.cmpi sge, %4, %5 : vector<8x8xi32>
    %cst_3 = arith.constant 0.000000e+00 : f32
    %cst_4 = arith.constant -1.000000e+09 : f32
    %7 = vector.broadcast %cst_3 : f32 to vector<8x8xf32>
    %8 = vector.broadcast %cst_4 : f32 to vector<8x8xf32>
    %9 = arith.select %6, %7, %8 : vector<8x8xi1>, vector<8x8xf32>
    %10 = vector.shape_cast %9 : vector<8x8xf32> to vector<1x8x8xf32>
    %11 = vector.extract_strided_slice %3 {offsets = [0, 0, 0], sizes = [2, 8, 8], strides = [1, 1, 1]} : vector<2x8x96xf32> to vector<2x8x8xf32>
    %12 = arith.truncf %11 : vector<2x8x8xf32> to vector<2x8x8xbf16>
    %13 = vector.extract_strided_slice %3 {offsets = [0, 0, 32], sizes = [2, 8, 8], strides = [1, 1, 1]} : vector<2x8x96xf32> to vector<2x8x8xf32>
    %14 = arith.truncf %13 : vector<2x8x8xf32> to vector<2x8x8xbf16>
    %15 = vector.extract_strided_slice %3 {offsets = [0, 0, 64], sizes = [2, 8, 8], strides = [1, 1, 1]} : vector<2x8x96xf32> to vector<2x8x8xf32>
    %16 = arith.truncf %15 : vector<2x8x8xf32> to vector<2x8x8xbf16>
    "tpu.trace_start"() <{level = 10 : i32, message = "bqd,bkd->bqk"}> : () -> ()
    %cst_5 = arith.constant dense<0.000000e+00> : vector<2x8x8xf32>
    %17 = tpu.matmul %12, %14, %cst_5 {dimension_numbers = #tpu.dot_dimension_numbers<[2], [2], [1], [1], [0, 0, 0, 1, 1, 1], [0], [0]>} : vector<2x8x8xbf16>, vector<2x8x8xbf16>, vector<2x8x8xf32> -> vector<2x8x8xf32>
    "tpu.trace_stop"() : () -> ()
    %cst_6 = arith.constant 0.176776692 : f32
    %18 = vector.broadcast %cst_6 : f32 to vector<2x8x8xf32>
    %19 = arith.mulf %17, %18 : vector<2x8x8xf32>
    %20 = vector.broadcast %10 : vector<1x8x8xf32> to vector<2x8x8xf32>
    %21 = arith.addf %19, %20 : vector<2x8x8xf32>
    %cst_7 = arith.constant dense<0xFF800000> : vector<2x8xf32>
    %22 = vector.multi_reduction <maximumf>, %21, %cst_7 [2] : vector<2x8x8xf32> to vector<2x8xf32>
    %23 = vector.shape_cast %22 : vector<2x8xf32> to vector<2x8x1xf32>
    %24 = vector.broadcast %23 : vector<2x8x1xf32> to vector<2x8x8xf32>
    %25 = arith.subf %21, %24 : vector<2x8x8xf32>
    %26 = math.exp %25 : vector<2x8x8xf32>
    %cst_8 = arith.constant dense<0.000000e+00> : vector<2x8xf32>
    %27 = vector.multi_reduction <add>, %26, %cst_8 [2] : vector<2x8x8xf32> to vector<2x8xf32>
    %28 = vector.shape_cast %27 : vector<2x8xf32> to vector<2x8x1xf32>
    %29 = tpu.reciprocal %28 {approx = true} : vector<2x8x1xf32> -> vector<2x8x1xf32>
    %30 = vector.broadcast %29 : vector<2x8x1xf32> to vector<2x8x8xf32>
    %31 = arith.mulf %26, %30 : vector<2x8x8xf32>
    %32 = arith.truncf %31 : vector<2x8x8xf32> to vector<2x8x8xbf16>
    "tpu.trace_start"() <{level = 10 : i32, message = "bqk,bkd->bqd"}> : () -> ()
    %cst_9 = arith.constant dense<0.000000e+00> : vector<2x8x8xf32>
    %33 = tpu.matmul %32, %16, %cst_9 {dimension_numbers = #tpu.dot_dimension_numbers<[2], [1], [1], [2], [0, 0, 0, 1, 1, 2], [0], [0]>} : vector<2x8x8xbf16>, vector<2x8x8xbf16>, vector<2x8x8xf32> -> vector<2x8x8xf32>
    "tpu.trace_stop"() : () -> ()
    %34 = vector.shape_cast %33 : vector<2x8x8xf32> to vector<16x8xf32>
    %35 = arith.truncf %34 : vector<16x8xf32> to vector<16x8xbf16>
    %c0_10 = arith.constant 0 : index
    %c0_11 = arith.constant 0 : index
    %c0_12 = arith.constant 0 : index
    %36 = vector.load %arg2[%c0_10, %c0_11, %c0_12] : memref<4x8x32xbf16, #tpu.memory_space<vmem>>, vector<1x8x32xbf16>
    %37 = vector.shape_cast %36 : vector<1x8x32xbf16> to vector<8x32xbf16>
    %cst_13 = arith.constant dense<0.000000e+00> : vector<16x32xf32>
    %38 = tpu.matmul %35, %37, %cst_13 {dimension_numbers = #tpu.dot_dimension_numbers<[1], [0], [0], [1], [0, 0, 1, 1], [], []>} : vector<16x8xbf16>, vector<8x32xbf16>, vector<16x32xf32> -> vector<16x32xf32>
    %39 = vector.extract_strided_slice %3 {offsets = [0, 0, 8], sizes = [2, 8, 8], strides = [1, 1, 1]} : vector<2x8x96xf32> to vector<2x8x8xf32>
    %40 = arith.truncf %39 : vector<2x8x8xf32> to vector<2x8x8xbf16>
    %41 = vector.extract_strided_slice %3 {offsets = [0, 0, 40], sizes = [2, 8, 8], strides = [1, 1, 1]} : vector<2x8x96xf32> to vector<2x8x8xf32>
    %42 = arith.truncf %41 : vector<2x8x8xf32> to vector<2x8x8xbf16>
    %43 = vector.extract_strided_slice %3 {offsets = [0, 0, 72], sizes = [2, 8, 8], strides = [1, 1, 1]} : vector<2x8x96xf32> to vector<2x8x8xf32>
    %44 = arith.truncf %43 : vector<2x8x8xf32> to vector<2x8x8xbf16>
    "tpu.trace_start"() <{level = 10 : i32, message = "bqd,bkd->bqk"}> : () -> ()
    %cst_14 = arith.constant dense<0.000000e+00> : vector<2x8x8xf32>
    %45 = tpu.matmul %40, %42, %cst_14 {dimension_numbers = #tpu.dot_dimension_numbers<[2], [2], [1], [1], [0, 0, 0, 1, 1, 1], [0], [0]>} : vector<2x8x8xbf16>, vector<2x8x8xbf16>, vector<2x8x8xf32> -> vector<2x8x8xf32>
    "tpu.trace_stop"() : () -> ()
    %cst_15 = arith.constant 0.176776692 : f32
    %46 = vector.broadcast %cst_15 : f32 to vector<2x8x8xf32>
    %47 = arith.mulf %45, %46 : vector<2x8x8xf32>
    %48 = vector.broadcast %10 : vector<1x8x8xf32> to vector<2x8x8xf32>
    %49 = arith.addf %47, %48 : vector<2x8x8xf32>
    %cst_16 = arith.constant dense<0xFF800000> : vector<2x8xf32>
    %50 = vector.multi_reduction <maximumf>, %49, %cst_16 [2] : vector<2x8x8xf32> to vector<2x8xf32>
    %51 = vector.shape_cast %50 : vector<2x8xf32> to vector<2x8x1xf32>
    %52 = vector.broadcast %51 : vector<2x8x1xf32> to vector<2x8x8xf32>
    %53 = arith.subf %49, %52 : vector<2x8x8xf32>
    %54 = math.exp %53 : vector<2x8x8xf32>
    %cst_17 = arith.constant dense<0.000000e+00> : vector<2x8xf32>
    %55 = vector.multi_reduction <add>, %54, %cst_17 [2] : vector<2x8x8xf32> to vector<2x8xf32>
    %56 = vector.shape_cast %55 : vector<2x8xf32> to vector<2x8x1xf32>
    %57 = tpu.reciprocal %56 {approx = true} : vector<2x8x1xf32> -> vector<2x8x1xf32>
    %58 = vector.broadcast %57 : vector<2x8x1xf32> to vector<2x8x8xf32>
    %59 = arith.mulf %54, %58 : vector<2x8x8xf32>
    %60 = arith.truncf %59 : vector<2x8x8xf32> to vector<2x8x8xbf16>
    "tpu.trace_start"() <{level = 10 : i32, message = "bqk,bkd->bqd"}> : () -> ()
    %cst_18 = arith.constant dense<0.000000e+00> : vector<2x8x8xf32>
    %61 = tpu.matmul %60, %44, %cst_18 {dimension_numbers = #tpu.dot_dimension_numbers<[2], [1], [1], [2], [0, 0, 0, 1, 1, 2], [0], [0]>} : vector<2x8x8xbf16>, vector<2x8x8xbf16>, vector<2x8x8xf32> -> vector<2x8x8xf32>
    "tpu.trace_stop"() : () -> ()
    %62 = vector.shape_cast %61 : vector<2x8x8xf32> to vector<16x8xf32>
    %63 = arith.truncf %62 : vector<16x8xf32> to vector<16x8xbf16>
    %c1 = arith.constant 1 : index
    %c0_19 = arith.constant 0 : index
    %c0_20 = arith.constant 0 : index
    %64 = vector.load %arg2[%c1, %c0_19, %c0_20] : memref<4x8x32xbf16, #tpu.memory_space<vmem>>, vector<1x8x32xbf16>
    %65 = vector.shape_cast %64 : vector<1x8x32xbf16> to vector<8x32xbf16>
    %cst_21 = arith.constant dense<0.000000e+00> : vector<16x32xf32>
    %66 = tpu.matmul %63, %65, %cst_21 {dimension_numbers = #tpu.dot_dimension_numbers<[1], [0], [0], [1], [0, 0, 1, 1], [], []>} : vector<16x8xbf16>, vector<8x32xbf16>, vector<16x32xf32> -> vector<16x32xf32>
    %67 = arith.addf %38, %66 : vector<16x32xf32>
    %68 = vector.extract_strided_slice %3 {offsets = [0, 0, 16], sizes = [2, 8, 8], strides = [1, 1, 1]} : vector<2x8x96xf32> to vector<2x8x8xf32>
    %69 = arith.truncf %68 : vector<2x8x8xf32> to vector<2x8x8xbf16>
    %70 = vector.extract_strided_slice %3 {offsets = [0, 0, 48], sizes = [2, 8, 8], strides = [1, 1, 1]} : vector<2x8x96xf32> to vector<2x8x8xf32>
    %71 = arith.truncf %70 : vector<2x8x8xf32> to vector<2x8x8xbf16>
    %72 = vector.extract_strided_slice %3 {offsets = [0, 0, 80], sizes = [2, 8, 8], strides = [1, 1, 1]} : vector<2x8x96xf32> to vector<2x8x8xf32>
    %73 = arith.truncf %72 : vector<2x8x8xf32> to vector<2x8x8xbf16>
    "tpu.trace_start"() <{level = 10 : i32, message = "bqd,bkd->bqk"}> : () -> ()
    %cst_22 = arith.constant dense<0.000000e+00> : vector<2x8x8xf32>
    %74 = tpu.matmul %69, %71, %cst_22 {dimension_numbers = #tpu.dot_dimension_numbers<[2], [2], [1], [1], [0, 0, 0, 1, 1, 1], [0], [0]>} : vector<2x8x8xbf16>, vector<2x8x8xbf16>, vector<2x8x8xf32> -> vector<2x8x8xf32>
    "tpu.trace_stop"() : () -> ()
    %cst_23 = arith.constant 0.176776692 : f32
    %75 = vector.broadcast %cst_23 : f32 to vector<2x8x8xf32>
    %76 = arith.mulf %74, %75 : vector<2x8x8xf32>
    %77 = vector.broadcast %10 : vector<1x8x8xf32> to vector<2x8x8xf32>
    %78 = arith.addf %76, %77 : vector<2x8x8xf32>
    %cst_24 = arith.constant dense<0xFF800000> : vector<2x8xf32>
    %79 = vector.multi_reduction <maximumf>, %78, %cst_24 [2] : vector<2x8x8xf32> to vector<2x8xf32>
    %80 = vector.shape_cast %79 : vector<2x8xf32> to vector<2x8x1xf32>
    %81 = vector.broadcast %80 : vector<2x8x1xf32> to vector<2x8x8xf32>
    %82 = arith.subf %78, %81 : vector<2x8x8xf32>
    %83 = math.exp %82 : vector<2x8x8xf32>
    %cst_25 = arith.constant dense<0.000000e+00> : vector<2x8xf32>
    %84 = vector.multi_reduction <add>, %83, %cst_25 [2] : vector<2x8x8xf32> to vector<2x8xf32>
    %85 = vector.shape_cast %84 : vector<2x8xf32> to vector<2x8x1xf32>
    %86 = tpu.reciprocal %85 {approx = true} : vector<2x8x1xf32> -> vector<2x8x1xf32>
    %87 = vector.broadcast %86 : vector<2x8x1xf32> to vector<2x8x8xf32>
    %88 = arith.mulf %83, %87 : vector<2x8x8xf32>
    %89 = arith.truncf %88 : vector<2x8x8xf32> to vector<2x8x8xbf16>
    "tpu.trace_start"() <{level = 10 : i32, message = "bqk,bkd->bqd"}> : () -> ()
    %cst_26 = arith.constant dense<0.000000e+00> : vector<2x8x8xf32>
    %90 = tpu.matmul %89, %73, %cst_26 {dimension_numbers = #tpu.dot_dimension_numbers<[2], [1], [1], [2], [0, 0, 0, 1, 1, 2], [0], [0]>} : vector<2x8x8xbf16>, vector<2x8x8xbf16>, vector<2x8x8xf32> -> vector<2x8x8xf32>
    "tpu.trace_stop"() : () -> ()
    %91 = vector.shape_cast %90 : vector<2x8x8xf32> to vector<16x8xf32>
    %92 = arith.truncf %91 : vector<16x8xf32> to vector<16x8xbf16>
    %c2 = arith.constant 2 : index
    %c0_27 = arith.constant 0 : index
    %c0_28 = arith.constant 0 : index
    %93 = vector.load %arg2[%c2, %c0_27, %c0_28] : memref<4x8x32xbf16, #tpu.memory_space<vmem>>, vector<1x8x32xbf16>
    %94 = vector.shape_cast %93 : vector<1x8x32xbf16> to vector<8x32xbf16>
    %cst_29 = arith.constant dense<0.000000e+00> : vector<16x32xf32>
    %95 = tpu.matmul %92, %94, %cst_29 {dimension_numbers = #tpu.dot_dimension_numbers<[1], [0], [0], [1], [0, 0, 1, 1], [], []>} : vector<16x8xbf16>, vector<8x32xbf16>, vector<16x32xf32> -> vector<16x32xf32>
    %96 = arith.addf %67, %95 : vector<16x32xf32>
    %97 = vector.extract_strided_slice %3 {offsets = [0, 0, 24], sizes = [2, 8, 8], strides = [1, 1, 1]} : vector<2x8x96xf32> to vector<2x8x8xf32>
    %98 = arith.truncf %97 : vector<2x8x8xf32> to vector<2x8x8xbf16>
    %99 = vector.extract_strided_slice %3 {offsets = [0, 0, 56], sizes = [2, 8, 8], strides = [1, 1, 1]} : vector<2x8x96xf32> to vector<2x8x8xf32>
    %100 = arith.truncf %99 : vector<2x8x8xf32> to vector<2x8x8xbf16>
    %101 = vector.extract_strided_slice %3 {offsets = [0, 0, 88], sizes = [2, 8, 8], strides = [1, 1, 1]} : vector<2x8x96xf32> to vector<2x8x8xf32>
    %102 = arith.truncf %101 : vector<2x8x8xf32> to vector<2x8x8xbf16>
    "tpu.trace_start"() <{level = 10 : i32, message = "bqd,bkd->bqk"}> : () -> ()
    %cst_30 = arith.constant dense<0.000000e+00> : vector<2x8x8xf32>
    %103 = tpu.matmul %98, %100, %cst_30 {dimension_numbers = #tpu.dot_dimension_numbers<[2], [2], [1], [1], [0, 0, 0, 1, 1, 1], [0], [0]>} : vector<2x8x8xbf16>, vector<2x8x8xbf16>, vector<2x8x8xf32> -> vector<2x8x8xf32>
    "tpu.trace_stop"() : () -> ()
    %cst_31 = arith.constant 0.176776692 : f32
    %104 = vector.broadcast %cst_31 : f32 to vector<2x8x8xf32>
    %105 = arith.mulf %103, %104 : vector<2x8x8xf32>
    %106 = vector.broadcast %10 : vector<1x8x8xf32> to vector<2x8x8xf32>
    %107 = arith.addf %105, %106 : vector<2x8x8xf32>
    %cst_32 = arith.constant dense<0xFF800000> : vector<2x8xf32>
    %108 = vector.multi_reduction <maximumf>, %107, %cst_32 [2] : vector<2x8x8xf32> to vector<2x8xf32>
    %109 = vector.shape_cast %108 : vector<2x8xf32> to vector<2x8x1xf32>
    %110 = vector.broadcast %109 : vector<2x8x1xf32> to vector<2x8x8xf32>
    %111 = arith.subf %107, %110 : vector<2x8x8xf32>
    %112 = math.exp %111 : vector<2x8x8xf32>
    %cst_33 = arith.constant dense<0.000000e+00> : vector<2x8xf32>
    %113 = vector.multi_reduction <add>, %112, %cst_33 [2] : vector<2x8x8xf32> to vector<2x8xf32>
    %114 = vector.shape_cast %113 : vector<2x8xf32> to vector<2x8x1xf32>
    %115 = tpu.reciprocal %114 {approx = true} : vector<2x8x1xf32> -> vector<2x8x1xf32>
    %116 = vector.broadcast %115 : vector<2x8x1xf32> to vector<2x8x8xf32>
    %117 = arith.mulf %112, %116 : vector<2x8x8xf32>
    %118 = arith.truncf %117 : vector<2x8x8xf32> to vector<2x8x8xbf16>
    "tpu.trace_start"() <{level = 10 : i32, message = "bqk,bkd->bqd"}> : () -> ()
    %cst_34 = arith.constant dense<0.000000e+00> : vector<2x8x8xf32>
    %119 = tpu.matmul %118, %102, %cst_34 {dimension_numbers = #tpu.dot_dimension_numbers<[2], [1], [1], [2], [0, 0, 0, 1, 1, 2], [0], [0]>} : vector<2x8x8xbf16>, vector<2x8x8xbf16>, vector<2x8x8xf32> -> vector<2x8x8xf32>
    "tpu.trace_stop"() : () -> ()
    %120 = vector.shape_cast %119 : vector<2x8x8xf32> to vector<16x8xf32>
    %121 = arith.truncf %120 : vector<16x8xf32> to vector<16x8xbf16>
    %c3 = arith.constant 3 : index
    %c0_35 = arith.constant 0 : index
    %c0_36 = arith.constant 0 : index
    %122 = vector.load %arg2[%c3, %c0_35, %c0_36] : memref<4x8x32xbf16, #tpu.memory_space<vmem>>, vector<1x8x32xbf16>
    %123 = vector.shape_cast %122 : vector<1x8x32xbf16> to vector<8x32xbf16>
    %cst_37 = arith.constant dense<0.000000e+00> : vector<16x32xf32>
    %124 = tpu.matmul %121, %123, %cst_37 {dimension_numbers = #tpu.dot_dimension_numbers<[1], [0], [0], [1], [0, 0, 1, 1], [], []>} : vector<16x8xbf16>, vector<8x32xbf16>, vector<16x32xf32> -> vector<16x32xf32>
    %125 = arith.addf %96, %124 : vector<16x32xf32>
    %c0_38 = arith.constant 0 : index
    %c0_39 = arith.constant 0 : index
    %126 = vector.load %arg3[%c0_38, %c0_39] : memref<1x32xf32, #tpu.memory_space<vmem>>, vector<1x32xf32>
    %127 = vector.broadcast %126 : vector<1x32xf32> to vector<16x32xf32>
    %128 = arith.addf %125, %127 : vector<16x32xf32>
    %c0_40 = arith.constant 0 : index
    %c0_41 = arith.constant 0 : index
    %129 = vector.load %arg4[%c0_40, %c0_41] : memref<16x32xf32, #tpu.memory_space<vmem>>, vector<16x32xf32>
    tpu.vector_store %arg4[%c0_40, %c0_41], %128 {strides = array<i32>} : memref<16x32xf32, #tpu.memory_space<vmem>>, vector<16x32xf32>,
    return
  }
}

</mosaic_0001>

<bundles_post_ra>
// kernel: tpu_custom_call.1
= control target key start
LH: loop header
LB: loop body
LE: loop exit
PB: predicated region body
PF: predicated region fallthrough
CT: control target
= control target key end

     0   :  { %9 = vsyncpa [#allocation3], 0  ;;  %s1905_s0 = inlined_call_operand.hbm [shape: bf16[16,32], index: 0, kind: input, shape index: {}]   ;;  %s1906_s1 = inlined_call_operand.hbm [shape: bf16[32,96], index: 1, kind: input, shape index: {}]   ;;  %s1907_s2 = inlined_call_operand.hbm [shape: bf16[4,8,32], index: 2, kind: input, shape index: {}]   ;;  %s1908_s3 = inlined_call_operand.vmem [shape: f32[1,32], index: 3, kind: input, shape index: {}]   ;;  %s1909_s4 = inlined_call_operand.hbm [shape: f32[16,32], index: 4, kind: output, shape index: {}]  }
   0x1   :  { %10 = vsyncpa [#allocation6], 0 }
   0x2   :  { %11 = vsyncpa [#allocation4], 0  ;;  %s1610_s15 = smov [#allocation5]   ;;  %s1611_s17 = smov [#allocation2]  }
   0x3   :  { %s29_s16 = sshll.u32 %s1610_s15, 4  ;;  %s17_s18 = sshll.u32 %s1611_s17, 4  ;;  %s30_s16 = int_to_ptr.vmem [resolvable:$true] %s29_s16  ;;  %s1656_s18 = int_to_ptr.vmem [resolvable:$true] %s17_s18 }
   0x4   :  { %s1516_s21 = scalar_lea.hbm %s1906_s1, 256 }
   0x5   :  { %p1517_p0 = scmp.ne.s32.totalorder %s1906_s1, %s1516_s21  ;;  %p1520_p1 = scmp.lt.u32.totalorder %s1516_s21, %s1906_s1 }
   0x7   :  { %p1522_p2 = pnand %p1520_p1, %p1517_p0 }
   0x9   :  { %1525 = shalt.err (!%p1522_p2)
}
   0xa   :  { %s1526_s26 = scalar_lea.vmem %s30_s16, 256  ;;  %p1531_p4 = scmp.lt.s32.totalorder %s30_s16, %s30_s16 }
   0xb   :  { %p1527_p3 = scmp.ne.s32.totalorder %s30_s16, %s1526_s26  ;;  %p1532_p5 = scmp.lt.s32.totalorder %s1526_s26, %s1526_s26 }
   0xd   :  { %p1533_p6 = por %p1532_p5, %p1531_p4 }
   0xf   :  { %p1534_p7 = pnand %p1533_p6, %p1527_p3 }
  0x11   :  { %1537 = shalt.err (!%p1534_p7)
}
  0x12   :  { %s1612_s27 = smov 64   ;;  %s1613_s28 = smov 4  }
  0x13   :  { %35 = dma.hbm_to_vmem [thread:$0]  %s1906_s1, 256, %s30_s16, [#allocation6], %s1612_s27, %s1612_s27, %s1613_s28  }
  0x14   :  { %s1538_s7 = scalar_lea.hbm %s1905_s0, 128 }
  0x15   :  { %p1539_p8 = scmp.ne.s32.totalorder %s1905_s0, %s1538_s7  ;;  %p1542_p9 = scmp.lt.u32.totalorder %s1538_s7, %s1905_s0 }
  0x17   :  { %p1544_p10 = pnand %p1542_p9, %p1539_p8 }
  0x19   :  { %1547 = shalt.err (!%p1544_p10)
}
  0x1a   :  { %s1548_s12 = scalar_lea.vmem %s1656_s18, 128  ;;  %p1553_p12 = scmp.lt.s32.totalorder %s1656_s18, %s1656_s18 }
  0x1b   :  { %p1549_p11 = scmp.ne.s32.totalorder %s1656_s18, %s1548_s12  ;;  %p1554_p13 = scmp.lt.s32.totalorder %s1548_s12, %s1548_s12 }
  0x1d   :  { %p1555_p0 = por %p1554_p13, %p1553_p12 }
  0x1f   :  { %p1556_p1 = pnand %p1555_p0, %p1549_p11 }
  0x21   :  { %1559 = shalt.err (!%p1556_p1)
}
  0x22   :  { %23 = dma.hbm_to_vmem [thread:$0]  %s1905_s0, 128, %s1656_s18, [#allocation3], %s1612_s27, %s1612_s27, %s1613_s28  }
  0x23   :  { %s1614_s14 = smov [#allocation7]   ;;  %s1560_s19 = scalar_lea.hbm %s1907_s2, 256 }
  0x24   :  { %s41_s15 = sshll.u32 %s1614_s14, 4  ;;  %p1561_p2 = scmp.ne.s32.totalorder %s1907_s2, %s1560_s19  ;;  %s42_s15 = int_to_ptr.vmem [resolvable:$true] %s41_s15 }
  0x25   :  { %p1564_p3 = scmp.lt.u32.totalorder %s1560_s19, %s1907_s2 }
  0x27   :  { %p1566_p4 = pnand %p1564_p3, %p1561_p2 }
  0x29   :  { %1569 = shalt.err (!%p1566_p4)
}
  0x2a   :  { %s1570_s24 = scalar_lea.vmem %s42_s15, 256  ;;  %p1575_p6 = scmp.lt.s32.totalorder %s42_s15, %s42_s15 }
  0x2b   :  { %p1571_p5 = scmp.ne.s32.totalorder %s42_s15, %s1570_s24  ;;  %p1576_p7 = scmp.lt.s32.totalorder %s1570_s24, %s1570_s24 }
  0x2d   :  { %p1577_p8 = por %p1576_p7, %p1575_p6 }
  0x2f   :  { %p1578_p9 = pnand %p1577_p8, %p1571_p5 }
  0x31   :  { %1581 = shalt.err (!%p1578_p9)
}
  0x32   :  { %47 = dma.hbm_to_vmem [thread:$0]  %s1907_s2, 256, %s42_s15, [#allocation6], %s1612_s27, %s1612_s27, %s1613_s28  }
  0x33   :  { %1604 = dma.done.wait [#allocation3], 128  }
  0x34   :  { %1605 = vsyncadd [#allocation3], 4294967168 }
  0x35   :  { %1606 = dma.done.wait [#allocation6], 512  }
  0x36   :  { %1607 = vsyncadd [#allocation6], 4294966784  ;;  %v1615_v0 = vmov 0.0   ;;  %vm1616_vm0 = vmmov 0   ;;  %v1481_v1 = vld [vmem:[#allocation5] sm:$0xff]   ;;  %v1482_v2 = vld [vmem:[#allocation5 + $0x8] sm:$0xff]   ;;  %v128_v14 = vlaneseq }
  0x37   :  { %1332 = vmatprep.subr.bf16.mxu0 %v1615_v0  ;;  %1336 = vmatprep.mubr.msk.bf16.mxu0 %vm1616_vm0, %v1615_v0  ;;  %v1483_v3 = vld [vmem:[#allocation2] sm:$0xff]   ;;  %vm83_vm1 = vcmask 261120   ;;  %s1617_s2 = smov 96   ;;  %vm139_vm2 = vcmask 64512   ;;  %v1618_v18 = vmov -1e+09  }
  0x38   :  { %1340 = vmatprep.subr.bf16.mxu1 %v1615_v0  ;;  %1342 = vmatprep.mubr.msk.bf16.mxu1 %vm1616_vm0, %v1615_v0  ;;  %v129_v15 = vshrl.u32 %v128_v14, 7  ;;  %v131_v16 = vand.u32 127, %v128_v14  ;;  %s1619_s25 = smov 88   ;;  %vm268_vm4 = vcmask 1043456   ;;  %s1620_s26 = smov 120  }
  0x39   :  { %1333 = vmatpush3.bf16.msra.mxu0 %v1481_v1  ;;  %s1622_s28 = smov 112   ;;  %s1623_s29 = smov 80  }
  0x3a   :  { %1334 = vmatprep.subr.bf16.mxu0 %v1615_v0  ;;  %vm132_vm3 = vcmp.ge.s32.totalorder %v129_v15, %v131_v16  ;;  %s1624_s30 = smov 48   ;;  %s1625_s5 = smov 72  }
  0x3b   :  { %v1737_v19 = vsel %vm132_vm3, 0.0, %v1618_v18  ;;  %s1626_s6 = smov 104   ;;  %s1627_s7 = smov 40  }
  0x3c   :  { %s1628_s10 = smov [#allocation8]  }
  0x3d   :  { %1335 = vmatpush3.bf16.msra.mxu0 %v1482_v2  ;;  %s1251_s11 = sshll.u32 %s1628_s10, 4  ;;  %s1252_s11 = int_to_ptr.vmem [resolvable:$true] %s1251_s11 }
  0x3e   :  { %1346 = vmatprep.subr.bf16.mxu0 %v1615_v0  ;;  %s1582_s12 = scalar_lea.vmem %s1252_s11, 256  ;;  %p1587_p11 = scmp.lt.s32.totalorder %s1252_s11, %s1252_s11 }
  0x3f   :  { %p1583_p10 = scmp.ne.s32.totalorder %s1252_s11, %s1582_s12  ;;  %p1588_p12 = scmp.lt.s32.totalorder %s1582_s12, %s1582_s12 }
  0x40   :  { %1337 = vmatmul.mubr.msk.bf16.vlgmr.msra.gmra.mrb[0].mxu0 %vm83_vm1, %v1483_v3 }
  0x41   :  { %1348 = vmatprep.mubr.msk.bf16.mxu0 %vm1616_vm0, %v1615_v0  ;;  %p1589_p13 = por %p1588_p12, %p1587_p11 }
  0x43   :  { %p1590_p0 = pnand %p1589_p13, %p1583_p10 }
 0x113   :  { %v121_v4 = vpop.f32.mrb[0].mxu0 }
 0x114   :  { %v1719_v5 = vpack.c.bf16 %v121_v4, %v121_v4  ;;  %v1338_v6 = vpop.f32.mrb[1].mxu0 }
 0x115   :  { %v124_v7 = vpop.f32.mrb[2].mxu0 }
 0x116   :  { %137 = vrot.lane.b32.xlu0 %v1719_v5, %s1617_s2  ;;  %v1339_v8 = vpop.f32.mrb[3].mxu0  ;;  %v1722_v9 = vpack.c.bf16 %v124_v7, %v124_v7 }
 0x11a   :  { %187 = vrot.lane.b32.xlu0 %v1722_v9, %s1617_s2 }
 0x188   :  { %v138_v10 = vpop.permute.xlu0 %137 }
 0x189   :  { %v144_v11 = vsel %vm139_vm2, %v138_v10, 0 }
 0x18a   :  { %1341 = vmatpush3.bf16.xpose.msra.mxu1 %v144_v11 }
 0x18b   :  { %1352 = vmatprep.subr.bf16.mxu1 %v1615_v0 }
 0x18c   :  { %v188_v12 = vpop.permute.xlu0 %187 }
 0x18d   :  { %v193_v13 = vsel %vm139_vm2, %v188_v12, 0 }
 0x18e   :  { %1347 = vmatpush3.bf16.xpose.msra.mxu0 %v193_v13 }
 0x18f   :  { %1358 = vmatprep.subr.bf16.mxu0 %v1615_v0 }
 0x191   :  { %1343 = vmatmul.mubr.msk.bf16.vlgmr.msra.gmra.mrb[0].mxu1 %vm139_vm2, %v1719_v5 }
 0x192   :  { %1354 = vmatprep.mubr.msk.bf16.mxu1 %vm1616_vm0, %v1615_v0 }
 0x195   :  { %1349 = vmatmul.mubr.msk.bf16.vlgmr.msra.gmra.mrb[4].mxu0 %vm139_vm2, %v1722_v9 }
 0x196   :  { %1360 = vmatprep.mubr.msk.bf16.mxu0 %vm1616_vm0, %v1615_v0 }
 0x264   :  { %v180_v17 = vpop.f32.mrb[0].mxu1 }
 0x265   :  { %v235_v20 = vmul.f32 0.17677669, %v180_v17  ;;  %v1344_v21 = vpop.f32.mrb[1].mxu1 }
 0x266   :  { %v183_v22 = vpop.f32.mrb[2].mxu1 }
 0x267   :  { %v1345_v23 = vpop.f32.mrb[3].mxu1  ;;  %v237_v24 = vadd.f32 %v235_v20, %v1737_v19 }
 0x268   :  { %v229_v25 = vpop.f32.mrb[4].mxu0 }
 0x269   :  { %v236_v26 = vmul.f32 0.17677669, %v229_v25  ;;  %v1350_v27 = vpop.f32.mrb[5].mxu0  ;;  %v239_v28 = vsel %vm139_vm2, %v237_v24, -inf }
 0x26a   :  { %240 = vmax.xlane.f32.xlu1 %v239_v28  ;;  %v232_v29 = vpop.f32.mrb[6].mxu0 }
 0x26b   :  { %v1351_v30 = vpop.f32.mrb[7].mxu0  ;;  %v238_v31 = vadd.f32 %v236_v26, %v1737_v19 }
 0x26d   :  { %v242_v32 = vsel %vm139_vm2, %v238_v31, -inf }
 0x26e   :  { %243 = vmax.xlane.f32.xlu1 %v242_v32 }
 0x27f   :  { %263 = vrot.lane.b32.xlu1 %v1719_v5, %s1612_s27 }
 0x283   :  { %312 = vrot.lane.b32.xlu1 %v1722_v9, %s1612_s27  ;;  %s1621_s27 = smov 56  }
 0x287   :  { %364 = vrot.lane.b32.xlu1 %v1719_v5, %s1619_s25 }
 0x2f7   :  { %v241_v33 = vpop.xlane.xlu1 %240 }
 0x2f8   :  { %v245_v34 = vsub.f32 %v237_v24, %v241_v33 }
 0x2fa   :  { %v247_v35 = vmul.f32 1.442695, %v245_v34 }
 0x2fb   :  { %v244_v36 = vpop.xlane.xlu1 %243 }
 0x2fc   :  { %1484 = vpow2.f32 %v247_v35  ;;  %v246_v37 = vsub.f32 %v238_v31, %v244_v36 }
 0x2fe   :  { %v249_v38 = vmul.f32 1.442695, %v246_v37 }
 0x2ff   :  { %v264_v39 = vpop.permute.xlu1 %263 }
 0x300   :  { %1486 = vpow2.f32 %v249_v38  ;;  %v270_v40 = vsel %vm268_vm4, %v264_v39, 0 }
 0x301   :  { %1353 = vmatpush3.bf16.msra.mxu1 %v270_v40 }
 0x302   :  { %1364 = vmatprep.subr.bf16.mxu1 %v1615_v0 }
 0x303   :  { %v313_v41 = vpop.permute.xlu1 %312 }
 0x304   :  { %v318_v42 = vsel %vm268_vm4, %v313_v41, 0  ;;  %v588_v41 = vld [vmem:[#allocation7 + $0x4] sm:$0xf] }
 0x305   :  { %1359 = vmatpush3.bf16.msra.mxu0 %v318_v42 }
 0x306   :  { %v1485_v43 = vpop.eup %1484  ;;  %1370 = vmatprep.subr.bf16.mxu0 %v1615_v0 }
 0x307   :  { %v251_v44 = vsel %vm139_vm2, %v1485_v43, 0.0  ;;  %v365_v47 = vpop.permute.xlu1 %364 }
 0x308   :  { %252 = vadd.xlane.f32.xlu0 %v251_v44  ;;  %v370_v54 = vsel %vm139_vm2, %v365_v47, 0  ;;  %v593_v44 = vsel %vm268_vm4, %v588_v41, 0 }
 0x30a   :  { %v1487_v45 = vpop.eup %1486 }
 0x30b   :  { %v254_v46 = vsel %vm139_vm2, %v1487_v45, 0.0 }
 0x30c   :  { %255 = vadd.xlane.f32.xlu1 %v254_v46  ;;  %v361_v46 = vld [vmem:[#allocation7] sm:$0xf] }
 0x31d   :  { %414 = vrot.lane.b32.xlu1 %v1722_v9, %s1619_s25 }
 0x31e   :  { %362 = vrot.lane.b32.xlu0 %v1719_v5, %s1620_s26 }
 0x321   :  { %412 = vrot.lane.b32.xlu1 %v1722_v9, %s1620_s26 }
 0x395   :  { %v253_v48 = vpop.xlane.xlu0 %252 }
 0x396   :  { %1488 = vrcp.f32 %v253_v48 }
 0x399   :  { %v256_v49 = vpop.xlane.xlu1 %255  ;;  %v363_v59 = vpop.permute.xlu0 %362 }
 0x39a   :  { %1490 = vrcp.f32 %v256_v49  ;;  %v640_v49 = vsel %vm268_vm4, %v361_v46, 0 }
 0x39d   :  { %v415_v56 = vpop.permute.xlu1 %414 }
 0x39e   :  { %v420_v58 = vsel %vm139_vm2, %v415_v56, 0 }
 0x3a0   :  { %v1489_v50 = vpop.eup %1488 }
 0x3a1   :  { %v259_v51 = vmul.f32 %v1489_v50, %v1485_v43  ;;  %v413_v60 = vpop.permute.xlu1 %412 }
 0x3a3   :  { %v261_v52 = vpack.c.bf16 %v259_v51, %v259_v51 }
 0x3a4   :  { %v1491_v53 = vpop.eup %1490 }
 0x3a5   :  { %v260_v55 = vmul.f32 %v1491_v53, %v1487_v45  ;;  %1355 = vmatmul.mubr.msk.bf16.vlgmr.msra.gmra.mrb[4].mxu1 %vm139_vm2, %v261_v52 }
 0x3a6   :  { %1365 = vmatpush3.bf16.xpose.msra.mxu1 %v370_v54  ;;  %1366 = vmatprep.mubr.msk.bf16.mxu1 %vm1616_vm0, %v1615_v0 }
 0x3a7   :  { %v262_v57 = vpack.c.bf16 %v260_v55, %v260_v55  ;;  %1376 = vmatprep.subr.bf16.mxu1 %v1615_v0 }
 0x3a9   :  { %1361 = vmatmul.mubr.msk.bf16.vlgmr.msra.gmra.mrb[8].mxu0 %vm139_vm2, %v262_v57 }
 0x3aa   :  { %1371 = vmatpush3.bf16.xpose.msra.mxu0 %v420_v58  ;;  %1372 = vmatprep.mubr.msk.bf16.mxu0 %vm1616_vm0, %v1615_v0 }
 0x3ab   :  { %1382 = vmatprep.subr.bf16.mxu0 %v1615_v0 }
 0x3ad   :  { %1367 = vmatmul.mubr.msk.bf16.vlgmr.msra.gmra.mrb[8].mxu1 %vm139_vm2, %v363_v59 }
 0x3ae   :  { %1378 = vmatprep.mubr.msk.bf16.mxu1 %vm1616_vm0, %v1615_v0 }
 0x3b1   :  { %1373 = vmatmul.mubr.msk.bf16.vlgmr.msra.gmra.mrb[12].mxu0 %vm139_vm2, %v413_v60 }
 0x3b2   :  { %1384 = vmatprep.mubr.msk.bf16.mxu0 %vm1616_vm0, %v1615_v0 }
 0x478   :  { %v1773_v61 = vpop.f32.mrb[4].mxu1 }
 0x479   :  { %v1356_v62 = vpop.f32.mrb[5].mxu1 }
 0x47a   :  { %v309_v63 = vpop.f32.mrb[6].mxu1 }
 0x47b   :  { %v1357_v1 = vpop.f32.mrb[7].mxu1 }
 0x47c   :  { %v1775_v2 = vpop.f32.mrb[8].mxu0 }
 0x47d   :  { %v360_v3 = vpack.c.bf16 %v1775_v2, %v1773_v61  ;;  %v1362_v4 = vpop.f32.mrb[9].mxu0 }
 0x47e   :  { %v357_v6 = vpop.f32.mrb[10].mxu0 }
 0x47f   :  { %v1363_v7 = vpop.f32.mrb[11].mxu0 }
 0x480   :  { %v406_v8 = vpop.f32.mrb[8].mxu1 }
 0x481   :  { %v462_v10 = vmul.f32 0.17677669, %v406_v8  ;;  %v1368_v11 = vpop.f32.mrb[9].mxu1 }
 0x482   :  { %v409_v12 = vpop.f32.mrb[10].mxu1 }
 0x483   :  { %v1369_v13 = vpop.f32.mrb[11].mxu1  ;;  %v464_v14 = vadd.f32 %v462_v10, %v1737_v19 }
 0x484   :  { %v456_v15 = vpop.f32.mrb[12].mxu0 }
 0x485   :  { %v463_v16 = vmul.f32 0.17677669, %v456_v15  ;;  %v1374_v17 = vpop.f32.mrb[13].mxu0  ;;  %v466_v18 = vsel %vm139_vm2, %v464_v14, -inf }
 0x486   :  { %467 = vmax.xlane.f32.xlu1 %v466_v18  ;;  %v459_v20 = vpop.f32.mrb[14].mxu0 }
 0x487   :  { %v1375_v21 = vpop.f32.mrb[15].mxu0  ;;  %v465_v22 = vadd.f32 %v463_v16, %v1737_v19 }
 0x489   :  { %v469_v23 = vsel %vm139_vm2, %v465_v22, -inf }
 0x48a   :  { %470 = vmax.xlane.f32.xlu0 %v469_v23 }
 0x4a0   :  { %538 = vrot.lane.b32.xlu0 %v1722_v9, %s1621_s27 }
 0x4a4   :  { %683 = vrot.lane.b32.xlu0 %v1719_v5, %s1622_s28 }
 0x513   :  { %v468_v24 = vpop.xlane.xlu1 %467 }
 0x514   :  { %v472_v25 = vsub.f32 %v464_v14, %v468_v24 }
 0x516   :  { %v474_v26 = vmul.f32 1.442695, %v472_v25 }
 0x517   :  { %v471_v27 = vpop.xlane.xlu0 %470 }
 0x518   :  { %1492 = vpow2.f32 %v474_v26  ;;  %v473_v28 = vsub.f32 %v465_v22, %v471_v27 }
 0x51a   :  { %v476_v29 = vmul.f32 1.442695, %v473_v28 }
 0x51b   :  { %v539_v30 = vpop.permute.xlu0 %538 }
 0x51c   :  { %1494 = vpow2.f32 %v476_v29  ;;  %v544_v31 = vsel %vm268_vm4, %v539_v30, 0 }
 0x51d   :  { %1383 = vmatpush3.bf16.msra.mxu0 %v544_v31 }
 0x51e   :  { %1394 = vmatprep.subr.bf16.mxu0 %v1615_v0 }
 0x522   :  { %v1493_v32 = vpop.eup %1492 }
 0x523   :  { %v478_v33 = vsel %vm139_vm2, %v1493_v32, 0.0 }
 0x524   :  { %479 = vadd.xlane.f32.xlu1 %v478_v33 }
 0x526   :  { %v1495_v34 = vpop.eup %1494 }
 0x527   :  { %v481_v35 = vsel %vm139_vm2, %v1495_v34, 0.0 }
 0x528   :  { %482 = vadd.xlane.f32.xlu1 %v481_v35 }
 0x539   :  { %490 = vrot.lane.b32.xlu1 %v1719_v5, %s1621_s27 }
 0x53d   :  { %685 = vrot.lane.b32.xlu1 %v1719_v5, %s1623_s29 }
 0x541   :  { %735 = vrot.lane.b32.xlu1 %v1722_v9, %s1623_s29 }
 0x545   :  { %733 = vrot.lane.b32.xlu1 %v1722_v9, %s1622_s28 }
 0x5b1   :  { %v480_v36 = vpop.xlane.xlu1 %479 }
 0x5b2   :  { %1496 = vrcp.f32 %v480_v36 }
 0x5b5   :  { %v483_v37 = vpop.xlane.xlu1 %482 }
 0x5b6   :  { %1498 = vrcp.f32 %v483_v37 }
 0x5b9   :  { %v491_v38 = vpop.permute.xlu1 %490 }
 0x5ba   :  { %v496_v39 = vsel %vm268_vm4, %v491_v38, 0 }
 0x5bb   :  { %1377 = vmatpush3.bf16.msra.mxu1 %v496_v39 }
 0x5bc   :  { %v1497_v40 = vpop.eup %1496  ;;  %1388 = vmatprep.subr.bf16.mxu1 %v1615_v0 }
 0x5bd   :  { %v486_v42 = vmul.f32 %v1497_v40, %v1493_v32  ;;  %v686_v50 = vpop.permute.xlu1 %685 }
 0x5be   :  { %v691_v62 = vsel %vm139_vm2, %v686_v50, 0 }
 0x5bf   :  { %v488_v43 = vpack.c.bf16 %v486_v42, %v486_v42 }
 0x5c0   :  { %v1499_v45 = vpop.eup %1498 }
 0x5c1   :  { %v487_v47 = vmul.f32 %v1499_v45, %v1495_v34  ;;  %1379 = vmatmul.mubr.msk.bf16.vlgmr.msra.gmra.mrb[12].mxu1 %vm139_vm2, %v488_v43  ;;  %v736_v51 = vpop.permute.xlu1 %735 }
 0x5c2   :  { %1389 = vmatpush3.bf16.msra.mxu1 %v593_v44  ;;  %1390 = vmatprep.mubr.msk.bf16.mxu1 %vm1616_vm0, %v1615_v0  ;;  %v741_v52 = vsel %vm139_vm2, %v736_v51, 0 }
 0x5c3   :  { %v489_v48 = vpack.c.bf16 %v487_v47, %v487_v47  ;;  %1400 = vmatprep.subr.bf16.mxu1 %v1615_v0 }
 0x5c5   :  { %1385 = vmatmul.mubr.msk.bf16.vlgmr.msra.gmra.mrb[16].mxu0 %vm139_vm2, %v489_v48  ;;  %v734_v53 = vpop.permute.xlu1 %733 }
 0x5c6   :  { %1395 = vmatpush3.bf16.msra.mxu0 %v640_v49  ;;  %1396 = vmatprep.mubr.msk.bf16.mxu0 %vm1616_vm0, %v1615_v0 }
 0x5c7   :  { %1406 = vmatprep.subr.bf16.mxu0 %v1615_v0 }
 0x5cd   :  { %1397 = vmatmul.mubr.msk.bf16.vlgmr.msra.gmra.mrb[20].mxu0 %vm139_vm2, %v360_v3  ;;  %v684_v3 = vpop.permute.xlu0 %683 }
 0x5ce   :  { %1408 = vmatprep.mubr.msk.bf16.mxu0 %vm1616_vm0, %v1615_v0 }
 0x5cf   :  { %1407 = vmatpush3.bf16.xpose.msra.mxu0 %v741_v52 }
 0x5d0   :  { %1418 = vmatprep.subr.bf16.mxu0 %v1615_v0 }
 0x5d6   :  { %1409 = vmatmul.mubr.msk.bf16.vlgmr.msra.gmra.mrb[24].mxu0 %vm139_vm2, %v734_v53 }
 0x5d7   :  { %1420 = vmatprep.mubr.msk.bf16.mxu0 %vm1616_vm0, %v1615_v0 }
 0x694   :  { %v532_v54 = vpop.f32.mrb[12].mxu1 }
 0x695   :  { %v1380_v55 = vpop.f32.mrb[13].mxu1 }
 0x696   :  { %v535_v56 = vpop.f32.mrb[14].mxu1 }
 0x697   :  { %v1381_v57 = vpop.f32.mrb[15].mxu1 }
 0x698   :  { %v580_v58 = vpop.f32.mrb[16].mxu0 }
 0x699   :  { %v586_v59 = vpack.c.bf16 %v580_v58, %v532_v54  ;;  %v1386_v60 = vpop.f32.mrb[17].mxu0  ;;  %v909_v54 = vld [vmem:[#allocation7 + $0x8] sm:$0xf] }
 0x69a   :  { %v583_v61 = vpop.f32.mrb[18].mxu0  ;;  %v914_v55 = vsel %vm268_vm4, %v909_v54, 0 }
 0x69b   :  { %v1387_v63 = vpop.f32.mrb[19].mxu0  ;;  %1391 = vmatmul.mubr.msk.bf16.vlgmr.msra.gmra.mrb[16].mxu1 %vm139_vm2, %v586_v59 }
 0x69c   :  { %1401 = vmatpush3.bf16.xpose.msra.mxu1 %v691_v62  ;;  %1402 = vmatprep.mubr.msk.bf16.mxu1 %vm1616_vm0, %v1615_v0 }
 0x69d   :  { %1412 = vmatprep.subr.bf16.mxu1 %v1615_v0 }
 0x6a0   :  { %v676_v1 = vpop.f32.mrb[20].mxu0 }
 0x6a1   :  { %v1398_v2 = vpop.f32.mrb[21].mxu0 }
 0x6a2   :  { %v679_v4 = vpop.f32.mrb[22].mxu0 }
 0x6a3   :  { %v1399_v6 = vpop.f32.mrb[23].mxu0  ;;  %1403 = vmatmul.mubr.msk.bf16.vlgmr.msra.gmra.mrb[20].mxu1 %vm139_vm2, %v684_v3 }
 0x6a4   :  { %1414 = vmatprep.mubr.msk.bf16.mxu1 %vm1616_vm0, %v1615_v0 }
 0x6a9   :  { %v777_v7 = vpop.f32.mrb[24].mxu0 }
 0x6aa   :  { %v784_v8 = vmul.f32 0.17677669, %v777_v7  ;;  %v1410_v10 = vpop.f32.mrb[25].mxu0 }
 0x6ab   :  { %v780_v11 = vpop.f32.mrb[26].mxu0 }
 0x6ac   :  { %v1411_v12 = vpop.f32.mrb[27].mxu0  ;;  %v786_v13 = vadd.f32 %v784_v8, %v1737_v19 }
 0x6ae   :  { %v790_v14 = vsel %vm139_vm2, %v786_v13, -inf }
 0x6af   :  { %791 = vmax.xlane.f32.xlu1 %v790_v14 }
 0x6c0   :  { %811 = vrot.lane.b32.xlu1 %v1719_v5, %s1624_s30 }
 0x6c4   :  { %961 = vrot.lane.b32.xlu1 %v1719_v5, %s1625_s5 }
 0x6c8   :  { %1011 = vrot.lane.b32.xlu1 %v1722_v9, %s1625_s5 }
 0x6cc   :  { %1009 = vrot.lane.b32.xlu1 %v1722_v9, %s1626_s6 }
 0x73c   :  { %v792_v15 = vpop.xlane.xlu1 %791 }
 0x73d   :  { %v794_v18 = vsub.f32 %v786_v13, %v792_v15 }
 0x73f   :  { %v797_v20 = vmul.f32 1.442695, %v794_v18 }
 0x740   :  { %v812_v16 = vpop.permute.xlu1 %811 }
 0x741   :  { %v817_v17 = vsel %vm268_vm4, %v812_v16, 0  ;;  %1500 = vpow2.f32 %v797_v20 }
 0x742   :  { %1413 = vmatpush3.bf16.msra.mxu1 %v817_v17 }
 0x743   :  { %1424 = vmatprep.subr.bf16.mxu1 %v1615_v0 }
 0x744   :  { %v962_v49 = vpop.permute.xlu1 %961 }
 0x745   :  { %v967_v51 = vsel %vm139_vm2, %v962_v49, 0 }
 0x748   :  { %v1012_v60 = vpop.permute.xlu1 %1011 }
 0x749   :  { %v1017_v2 = vsel %vm139_vm2, %v1012_v60, 0 }
 0x74b   :  { %v1501_v34 = vpop.eup %1500 }
 0x74c   :  { %v802_v35 = vsel %vm139_vm2, %v1501_v34, 0.0  ;;  %v1010_v12 = vpop.permute.xlu1 %1009 }
 0x76e   :  { %v629_v21 = vpop.f32.mrb[16].mxu1 }
 0x76f   :  { %v1834_v22 = vadd.f32 %v676_v1, %v629_v21  ;;  %v1392_v23 = vpop.f32.mrb[17].mxu1 }
 0x770   :  { %v632_v24 = vpop.f32.mrb[18].mxu1 }
 0x771   :  { %v1836_v25 = vadd.f32 %v679_v4, %v632_v24  ;;  %v1393_v26 = vpop.f32.mrb[19].mxu1 }
 0x776   :  { %v727_v27 = vpop.f32.mrb[20].mxu1 }
 0x777   :  { %v783_v28 = vmul.f32 0.17677669, %v727_v27  ;;  %v1404_v29 = vpop.f32.mrb[21].mxu1 }
 0x778   :  { %v730_v30 = vpop.f32.mrb[22].mxu1 }
 0x779   :  { %v1405_v31 = vpop.f32.mrb[23].mxu1  ;;  %v785_v32 = vadd.f32 %v783_v28, %v1737_v19 }
 0x77b   :  { %v787_v33 = vsel %vm139_vm2, %v785_v32, -inf }
 0x77c   :  { %788 = vmax.xlane.f32.xlu0 %v787_v33 }
 0x780   :  { %803 = vadd.xlane.f32.xlu0 %v802_v35 }
 0x809   :  { %v789_v36 = vpop.xlane.xlu0 %788 }
 0x80a   :  { %v793_v37 = vsub.f32 %v785_v32, %v789_v36 }
 0x80c   :  { %v795_v38 = vmul.f32 1.442695, %v793_v37 }
 0x80d   :  { %v804_v41 = vpop.xlane.xlu0 %803 }
 0x80e   :  { %1502 = vpow2.f32 %v795_v38 }
 0x80f   :  { %1504 = vrcp.f32 %v804_v41 }
 0x818   :  { %v1503_v39 = vpop.eup %1502 }
 0x819   :  { %v799_v40 = vsel %vm139_vm2, %v1503_v39, 0.0  ;;  %v1505_v42 = vpop.eup %1504 }
 0x81a   :  { %800 = vadd.xlane.f32.xlu0 %v799_v40  ;;  %v808_v44 = vmul.f32 %v1505_v42, %v1501_v34  ;;  %v1185_v42 = vld [vmem:[#allocation7 + $0xc] sm:$0xf] }
 0x81c   :  { %v810_v47 = vpack.c.bf16 %v808_v44, %v808_v44 }
 0x830   :  { %859 = vrot.lane.b32.xlu0 %v1722_v9, %s1624_s30 }
 0x834   :  { %959 = vrot.lane.b32.xlu0 %v1719_v5, %s1626_s6 }
 0x8a7   :  { %v801_v43 = vpop.xlane.xlu0 %800 }
 0x8a8   :  { %1506 = vrcp.f32 %v801_v43  ;;  %v1190_v43 = vsel %vm268_vm4, %v1185_v42, 0 }
 0x8ab   :  { %v860_v45 = vpop.permute.xlu0 %859 }
 0x8ac   :  { %v865_v46 = vsel %vm268_vm4, %v860_v45, 0 }
 0x8ad   :  { %1419 = vmatpush3.bf16.msra.mxu0 %v865_v46 }
 0x8ae   :  { %1430 = vmatprep.subr.bf16.mxu0 %v1615_v0 }
 0x8af   :  { %v960_v53 = vpop.permute.xlu0 %959 }
 0x8b0   :  { %1421 = vmatmul.mubr.msk.bf16.vlgmr.msra.gmra.mrb[28].mxu0 %vm139_vm2, %v810_v47 }
 0x8b1   :  { %1432 = vmatprep.mubr.msk.bf16.mxu0 %vm1616_vm0, %v1615_v0 }
 0x8b2   :  { %v1507_v48 = vpop.eup %1506 }
 0x8b3   :  { %v807_v50 = vmul.f32 %v1507_v48, %v1503_v39 }
 0x8b5   :  { %v809_v52 = vpack.c.bf16 %v807_v50, %v807_v50 }
 0x8b6   :  { %1431 = vmatpush3.bf16.xpose.msra.mxu0 %v967_v51 }
 0x8b7   :  { %1415 = vmatmul.mubr.msk.bf16.vlgmr.msra.gmra.mrb[24].mxu1 %vm139_vm2, %v809_v52  ;;  %1442 = vmatprep.subr.bf16.mxu0 %v1615_v0 }
 0x8b8   :  { %1426 = vmatprep.mubr.msk.bf16.mxu1 %vm1616_vm0, %v1615_v0  ;;  %1425 = vmatpush3.bf16.msra.mxu1 %v914_v55 }
 0x8b9   :  { %1436 = vmatprep.subr.bf16.mxu1 %v1615_v0 }
 0x8bd   :  { %1433 = vmatmul.mubr.msk.bf16.vlgmr.msra.gmra.mrb[32].mxu0 %vm139_vm2, %v960_v53 }
 0x8be   :  { %1444 = vmatprep.mubr.msk.bf16.mxu0 %vm1616_vm0, %v1615_v0 }
 0x983   :  { %v901_v56 = vpop.f32.mrb[28].mxu0 }
 0x984   :  { %v1422_v57 = vpop.f32.mrb[29].mxu0 }
 0x985   :  { %v904_v58 = vpop.f32.mrb[30].mxu0 }
 0x986   :  { %v1423_v59 = vpop.f32.mrb[31].mxu0  ;;  %v1288_v58 = vld [vmem:[%s1908_s3] ss:$0 sm:$0xff] }
 0x98a   :  { %v853_v61 = vpop.f32.mrb[24].mxu1 }
 0x98b   :  { %v907_v62 = vpack.c.bf16 %v901_v56, %v853_v61  ;;  %v1416_v63 = vpop.f32.mrb[25].mxu1 }
 0x98c   :  { %v856_v1 = vpop.f32.mrb[26].mxu1 }
 0x98d   :  { %v1417_v3 = vpop.f32.mrb[27].mxu1  ;;  %1427 = vmatmul.mubr.msk.bf16.vlgmr.msra.gmra.mrb[28].mxu1 %vm139_vm2, %v907_v62 }
 0x98e   :  { %1437 = vmatpush3.bf16.xpose.msra.mxu1 %v1017_v2  ;;  %1438 = vmatprep.mubr.msk.bf16.mxu1 %vm1616_vm0, %v1615_v0 }
 0x98f   :  { %1448 = vmatprep.subr.bf16.mxu1 %v1615_v0 }
 0x990   :  { %v1003_v4 = vpop.f32.mrb[32].mxu0 }
 0x991   :  { %v1059_v6 = vmul.f32 0.17677669, %v1003_v4  ;;  %v1434_v7 = vpop.f32.mrb[33].mxu0 }
 0x992   :  { %v1006_v8 = vpop.f32.mrb[34].mxu0 }
 0x993   :  { %v1435_v10 = vpop.f32.mrb[35].mxu0  ;;  %v1061_v11 = vadd.f32 %v1059_v6, %v1737_v19 }
 0x995   :  { %1439 = vmatmul.mubr.msk.bf16.vlgmr.msra.gmra.mrb[32].mxu1 %vm139_vm2, %v1010_v12  ;;  %v1063_v13 = vsel %vm139_vm2, %v1061_v11, -inf }
 0x996   :  { %1064 = vmax.xlane.f32.xlu0 %v1063_v13  ;;  %1450 = vmatprep.mubr.msk.bf16.mxu1 %vm1616_vm0, %v1615_v0 }
 0xa23   :  { %v1065_v14 = vpop.xlane.xlu0 %1064 }
 0xa24   :  { %v1069_v15 = vsub.f32 %v1061_v11, %v1065_v14 }
 0xa26   :  { %v1071_v16 = vmul.f32 1.442695, %v1069_v15 }
 0xa28   :  { %1508 = vpow2.f32 %v1071_v16 }
 0xa32   :  { %v1509_v17 = vpop.eup %1508 }
 0xa33   :  { %v1075_v18 = vsel %vm139_vm2, %v1509_v17, 0.0 }
 0xa34   :  { %1076 = vadd.xlane.f32.xlu0 %v1075_v18 }
 0xa60   :  { %v950_v20 = vpop.f32.mrb[28].mxu1 }
 0xa61   :  { %v957_v21 = vadd.f32 %v950_v20, %v1834_v22  ;;  %v1428_v23 = vpop.f32.mrb[29].mxu1 }
 0xa62   :  { %v953_v24 = vpop.f32.mrb[30].mxu1 }
 0xa63   :  { %v958_v26 = vadd.f32 %v953_v24, %v1836_v25  ;;  %v1429_v27 = vpop.f32.mrb[31].mxu1 }
 0xa68   :  { %v1053_v28 = vpop.f32.mrb[32].mxu1 }
 0xa69   :  { %v1060_v29 = vmul.f32 0.17677669, %v1053_v28  ;;  %v1440_v30 = vpop.f32.mrb[33].mxu1 }
 0xa6a   :  { %v1056_v31 = vpop.f32.mrb[34].mxu1 }
 0xa6b   :  { %v1441_v32 = vpop.f32.mrb[35].mxu1  ;;  %v1062_v33 = vadd.f32 %v1060_v29, %v1737_v19 }
 0xa6d   :  { %v1066_v34 = vsel %vm139_vm2, %v1062_v33, -inf }
 0xa6e   :  { %1067 = vmax.xlane.f32.xlu1 %v1066_v34 }
 0xa7f   :  { %1087 = vrot.lane.b32.xlu1 %v1719_v5, %s1627_s7 }
 0xac1   :  { %v1077_v35 = vpop.xlane.xlu0 %1076 }
 0xac2   :  { %1510 = vrcp.f32 %v1077_v35 }
 0xacc   :  { %v1511_v22 = vpop.eup %1510 }
 0xacd   :  { %v1083_v25 = vmul.f32 %v1511_v22, %v1509_v17 }
 0xacf   :  { %v1085_v41 = vpack.c.bf16 %v1083_v25, %v1083_v25 }
 0xafb   :  { %v1068_v36 = vpop.xlane.xlu1 %1067 }
 0xafc   :  { %v1070_v37 = vsub.f32 %v1062_v33, %v1068_v36 }
 0xafe   :  { %v1073_v38 = vmul.f32 1.442695, %v1070_v37 }
 0xaff   :  { %v1088_v39 = vpop.permute.xlu1 %1087 }
 0xb00   :  { %1512 = vpow2.f32 %v1073_v38  ;;  %v1093_v40 = vsel %vm268_vm4, %v1088_v39, 0 }
 0xb01   :  { %1443 = vmatpush3.bf16.msra.mxu0 %v1093_v40 }
 0xb02   :  { %1454 = vmatprep.subr.bf16.mxu0 %v1615_v0 }
 0xb04   :  { %1445 = vmatmul.mubr.msk.bf16.vlgmr.msra.gmra.mrb[36].mxu0 %vm139_vm2, %v1085_v41 }
 0xb05   :  { %1456 = vmatprep.mubr.msk.bf16.mxu0 %vm1616_vm0, %v1615_v0  ;;  %1455 = vmatpush3.bf16.msra.mxu0 %v1190_v43 }
 0xb0a   :  { %v1513_v5 = vpop.eup %1512 }
 0xb0b   :  { %v1078_v19 = vsel %vm139_vm2, %v1513_v5, 0.0 }
 0xb0c   :  { %1079 = vadd.xlane.f32.xlu0 %v1078_v19 }
 0xb22   :  { %1135 = vrot.lane.b32.xlu0 %v1722_v9, %s1627_s7 }
 0xb99   :  { %v1080_v44 = vpop.xlane.xlu0 %1079 }
 0xb9a   :  { %1514 = vrcp.f32 %v1080_v44 }
 0xb9d   :  { %v1136_v45 = vpop.permute.xlu0 %1135 }
 0xb9e   :  { %v1141_v46 = vsel %vm268_vm4, %v1136_v45, 0 }
 0xb9f   :  { %1449 = vmatpush3.bf16.msra.mxu1 %v1141_v46 }
 0xba4   :  { %v1515_v47 = vpop.eup %1514 }
 0xba5   :  { %v1084_v48 = vmul.f32 %v1515_v47, %v1513_v5 }
 0xba7   :  { %v1086_v49 = vpack.c.bf16 %v1084_v48, %v1084_v48 }
 0xba9   :  { %1451 = vmatmul.mubr.msk.bf16.vlgmr.msra.gmra.mrb[36].mxu1 %vm139_vm2, %v1086_v49 }
 0xbd7   :  { %v1129_v0 = vpop.f32.mrb[36].mxu0 }
 0xbd8   :  { %v1446_v50 = vpop.f32.mrb[37].mxu0 }
 0xbd9   :  { %v1132_v51 = vpop.f32.mrb[38].mxu0 }
 0xbda   :  { %v1447_v52 = vpop.f32.mrb[39].mxu0 }
 0xc7c   :  { %v1177_v9 = vpop.f32.mrb[36].mxu1 }
 0xc7d   :  { %v1183_v53 = vpack.c.bf16 %v1177_v9, %v1129_v0  ;;  %v1452_v54 = vpop.f32.mrb[37].mxu1 }
 0xc7e   :  { %v1180_v55 = vpop.f32.mrb[38].mxu1 }
 0xc7f   :  { %v1453_v56 = vpop.f32.mrb[39].mxu1  ;;  %1457 = vmatmul.mubr.msk.bf16.vlgmr.msra.gmra.mrb[40].mxu0 %vm139_vm2, %v1183_v53 }
 0xd52   :  { %v1226_v57 = vpop.f32.mrb[40].mxu0 }
 0xd53   :  { %v1233_v59 = vadd.f32 %v1226_v57, %v957_v21  ;;  %v1458_v60 = vpop.f32.mrb[41].mxu0 }
 0xd54   :  { %v1229_v61 = vpop.f32.mrb[42].mxu0 }
 0xd55   :  { %v1242_v62 = vadd.f32 %v1288_v58, %v1233_v59  ;;  %v1234_v63 = vadd.f32 %v1229_v61, %v958_v26  ;;  %v1459_v1 = vpop.f32.mrb[43].mxu0 }
 0xd57   :  { %1244 = vst.msk [vmem:[#allocation8] sm:$0xff] %vm83_vm1, %v1242_v62  ;;  %v1243_v2 = vadd.f32 %v1288_v58, %v1234_v63 }
 0xd59   :  { %1245 = vst.msk [vmem:[#allocation8 + $0x8] sm:$0xff] %vm83_vm1, %v1243_v2 }
 0xd5a   :  { %1593 = shalt.err (!%p1590_p0)
}
 0xd5b   :  { %s1594_s13 = scalar_lea.hbm %s1909_s4, 256 }
 0xd5c   :  { %p1595_p1 = scmp.ne.s32.totalorder %s1909_s4, %s1594_s13  ;;  %p1598_p2 = scmp.lt.u32.totalorder %s1594_s13, %s1909_s4 }
 0xd5e   :  { %p1600_p3 = pnand %p1598_p2, %p1595_p1 }
 0xd60   :  { %1603 = shalt.err (!%p1600_p3)
}
 0xd61   :  { %s1629_s19 = smov 128   ;;  %s1630_s20 = smov 8  }
 0xd62   :  { %1257 = dma.vmem_to_hbm [thread:$0]  %s1252_s11, 256, %s1909_s4, [#allocation4], %s1629_s19, %s1629_s19, %s1630_s20  }
 0xd63   :  { %1608 = dma.done.wait [#allocation4], 256  }
 0xd64   :  { %1609 = vsyncadd [#allocation4], 4294967040 }
 0xd65   :  { %1261 = vsyncpa [#allocation3], 1 }
 0xd66   :  { %1262 = vsyncpa [#allocation6], 1 }
 0xd67   :  { %1263 = vsyncpa [#allocation4], 1 }

</bundles_post_ra>
